<compile_context>
chip_gen: v6e
topology: v6e:2x2x1
jax: 0.10.0
libtpu: 0.0.40
codegen_flags: <defaults>
</compile_context>

<pallas_src>
import functools
import math
import numpy as np
import jax
import jax.numpy as jnp
from jax.experimental import pallas as pl
from jax.experimental.pallas import tpu as pltpu


# ----------------------------- Pallas kernels ------------------------------ #

def _bilinear_resize_kernel(x_ref, rh_ref, rw_ref, o_ref):
    """Whole-batch bilinear resize.  Contract the lane (W) axis first so the big
    input never needs a pre-transpose; single grid step (tiny per-image work)."""
    B, C, Hin, Win = x_ref.shape
    Hout = rh_ref.shape[0]
    Wout = rw_ref.shape[0]
    x = x_ref[...].astype(jnp.float32).reshape(B * C, Hin, Win)
    t = jnp.einsum("nhw,jw->nhj", x, rw_ref[...],
                   preferred_element_type=jnp.float32)          # (B*C, Hin, Wout)
    o = jnp.einsum("nhj,ih->nij", t, rh_ref[...],
                   preferred_element_type=jnp.float32)          # (B*C, Hout, Wout)
    o_ref[...] = o.reshape(B, C, Hout, Wout).astype(o_ref.dtype)


def _tower_layer_kernel(xp_ref, w_pe_ref, b_pe_ref, cls_ref, pos_ref,
                        preg_ref, preb_ref,
                        ln1g_ref, ln1b_ref, wqkv_ref, bqkv_ref, wo_ref, bo_ref,
                        ln2g_ref, ln2b_ref, fc1w_ref, fc1b_ref, fc2w_ref, fc2b_ref,
                        o_ref, h_ref, *, num_layers, num_heads, seq_len):
    """One transformer layer per grid step; activation carried in VMEM scratch.

    Grid: (batch_tiles, num_layers), semantics ("parallel", "arbitrary").
    xp block: (Bt, Np, Cpp) bf16 im2col'ed patches.
    Output block: (Bt, 1, D) = CLS row of the rank-3 token features.
    """
    li = pl.program_id(1)
    Bt, S_pad, D = h_ref.shape
    Np = xp_ref.shape[1]
    Cpp = xp_ref.shape[2]
    H = num_heads
    hd = D // H
    S = seq_len                      # real token count (<= S_pad, pad rows masked)
    R = Bt * S_pad
    scale = 1.0 / math.sqrt(hd)
    f32, bf16 = jnp.float32, jnp.bfloat16

    def layernorm(x, g, b):
        mean = jnp.mean(x, axis=-1, keepdims=True)
        var = jnp.mean(jnp.square(x - mean), axis=-1, keepdims=True)
        return (x - mean) * jax.lax.rsqrt(var + 1e-5) * g + b

    # ---- layer 0 only: patch-embed + CLS + positional + pre-LN into scratch ----
    @pl.when(li == 0)
    def _init():
        pos = pos_ref[...]                                          # (S, D) f32
        xp = xp_ref[...].reshape(Bt * Np, Cpp)                      # bf16
        tok = jnp.dot(xp, w_pe_ref[...],
                      preferred_element_type=f32) + b_pe_ref[...]   # (Bt*Np, D) f32
        tok = tok.reshape(Bt, Np, D) + pos[1:S, :][None]
        cls_row = jnp.broadcast_to((cls_ref[...] + pos[0:1, :])[None], (Bt, 1, D))
        h_ref[...] = jnp.zeros_like(h_ref)          # zero padded rows
        h_ref[:, 0:1, :] = cls_row                  # CLS directly into row 0
        h_ref[:, 1:1 + Np, :] = tok                 # patches into rows 1..Np
        h_ref[...] = layernorm(h_ref[...], preg_ref[...], preb_ref[...])

    # ------------------------ one transformer layer --------------------------- #
    h = h_ref[...]                                                   # (Bt, S_pad, D) f32

    # attention (pre-LN, fused QKV, batched heads, residual fused)
    hn = layernorm(h, ln1g_ref[0], ln1b_ref[0])
    qkv = jnp.dot(hn.reshape(R, D).astype(bf16), wqkv_ref[0],
                  preferred_element_type=f32) + bqkv_ref[0]          # (R, 3D) f32
    qkv = qkv.reshape(Bt, S_pad, 3 * D).astype(bf16)

    def split_heads(base):
        # lane slices stacked on a new leading head axis -> single batched matmul
        return jnp.stack([qkv[:, :, base + i * hd: base + (i + 1) * hd]
                          for i in range(H)], axis=1).reshape(Bt * H, S_pad, hd)

    q = split_heads(0)
    k = split_heads(D)
    v = split_heads(2 * D)

    s = jnp.einsum("bqd,bkd->bqk", q, k,
                   preferred_element_type=f32) * scale               # (Bt*H, S, S) f32
    if S_pad != S:  # mask padded key positions
        kidx = jax.lax.broadcasted_iota(jnp.int32, (1, 1, S_pad), 2)
        s = jnp.where(kidx < S, s, -1e30)
    s = s - jnp.max(s, axis=-1, keepdims=True)
    p = jnp.exp(s)
    p = p * pl.reciprocal(jnp.sum(p, axis=-1, keepdims=True), approx=True)
    attn = jnp.einsum("bqk,bkd->bqd", p.astype(bf16), v,
                      preferred_element_type=f32)                    # (Bt*H, S, hd) f32
    attn = attn.reshape(Bt, H, S_pad, hd)
    attn = jnp.concatenate([attn[:, i] for i in range(H)], axis=-1)  # (Bt, S_pad, D)
    h = h + (jnp.dot(attn.reshape(R, D).astype(bf16), wo_ref[0],
                     preferred_element_type=f32) + bo_ref[0]).reshape(Bt, S_pad, D)

    # MLP (pre-LN, quick-gelu, residual fused)
    hn = layernorm(h, ln2g_ref[0], ln2b_ref[0])
    m = jnp.dot(hn.reshape(R, D).astype(bf16), fc1w_ref[0],
                preferred_element_type=f32) + fc1b_ref[0]            # (R, M) f32
    m = m * jax.nn.sigmoid(1.702 * m)                                # quick-gelu
    h = h + (jnp.dot(m.astype(bf16), fc2w_ref[0],
                     preferred_element_type=f32) + fc2b_ref[0]).reshape(Bt, S_pad, D)

    h_ref[...] = h

    # CLS-token selection (features[:, 0, :]) written once at the last layer
    @pl.when(li == num_layers - 1)
    def _finalize():
        o_ref[...] = h[:, 0:1, :].astype(o_ref.dtype)


# ------------------------------ kernel wrappers ----------------------------- #

def _bilinear_matrix(out_size, in_size):
    """Row-stochastic matrix matching F.interpolate(bilinear, align_corners=False)."""
    scale = in_size / out_size
    src = np.maximum((np.arange(out_size) + 0.5) * scale - 0.5, 0.0)
    i0 = np.minimum(np.floor(src).astype(np.int64), in_size - 1)
    i1 = np.minimum(i0 + 1, in_size - 1)
    w1 = src - i0
    w0 = 1.0 - w1
    mat = np.zeros((out_size, in_size), dtype=np.float32)
    for o in range(out_size):
        mat[o, i0[o]] += w0[o]
        mat[o, i1[o]] += w1[o]
    return mat


def pallas_bilinear_resize(x, out_h, out_w, out_dtype=jnp.bfloat16):
    B, C, Hin, Win = x.shape
    rh = jnp.asarray(_bilinear_matrix(out_h, Hin))
    rw = jnp.asarray(_bilinear_matrix(out_w, Win))
    # Whole batch in a single invocation (no grid): per-step overhead removed,
    # inputs are tiny and live fully in VMEM.
    return pl.pallas_call(
        _bilinear_resize_kernel,
        out_shape=jax.ShapeDtypeStruct((B, C, out_h, out_w), out_dtype),
    )(x.astype(jnp.float32), rh, rw)


def fused_vision_tower(packed, x, cfg, batch_tile=None):
    """x: (B, C, expected, expected) NCHW.  Returns (B, 1, D): CLS row of features."""
    B, C, Hs, Ws = x.shape
    p, D, H, L = cfg["patch"], cfg["hidden"], cfg["heads"], cfg["layers"]
    Hp, Wp = Hs // p, Ws // p
    Np = Hp * Wp
    Cpp = C * p * p
    S = Np + 1
    S_pad = ((S + 7) // 8) * 8            # pad token rows to a sublane multiple
    # Batch tile = matmul-M booster; tune per generation (larger on v5e/v6e,
    # smaller on v7x's 64 MiB VMEM).
    Bt = batch_tile if batch_tile is not None else min(B, 8)
    assert B % Bt == 0, (B, Bt)

    # TODO(synk): fuse this im2col (reshape+transpose) into the resize kernel /
    # an Element-indexed BlockSpec to avoid one HBM round trip; kept in XLA here.
    xp = (x.reshape(B, C, Hp, p, Wp, p)
            .transpose(0, 2, 4, 1, 3, 5)
            .reshape(B, Np, Cpp)
            .astype(jnp.bfloat16))

    def _const_spec(arr):
        nd = arr.ndim
        return pl.BlockSpec(arr.shape, lambda b, l, _nd=nd: (0,) * _nd)

    def _layer_spec(arr):
        return pl.BlockSpec((1,) + arr.shape[1:], lambda b, l: (l, 0, 0))

    operands = (xp, packed["w_pe"], packed["b_pe"], packed["cls"], packed["pos"],
                packed["preg"], packed["preb"],
                packed["ln1g"], packed["ln1b"], packed["wqkv"], packed["bqkv"],
                packed["wo"], packed["bo"], packed["ln2g"], packed["ln2b"],
                packed["fc1w"], packed["fc1b"], packed["fc2w"], packed["fc2b"])

    in_specs = [pl.BlockSpec((Bt, Np, Cpp), lambda b, l: (b, 0, 0))]      # xp
    in_specs += [_const_spec(op) for op in operands[1:7]]                 # tower-level params
    in_specs += [_layer_spec(op) for op in operands[7:]]                  # per-layer weights

    kernel = functools.partial(_tower_layer_kernel,
                               num_layers=L, num_heads=H, seq_len=S)
    return pl.pallas_call(
        kernel,
        out_shape=jax.ShapeDtypeStruct((B, 1, D), jnp.float32),
        grid=(B // Bt, L),
        in_specs=in_specs,
        out_specs=pl.BlockSpec((Bt, 1, D), lambda b, l: (b, 0, 0)),
        scratch_shapes=[pltpu.VMEM((Bt, S_pad, D), jnp.float32)],
        compiler_params=pltpu.CompilerParams(
            dimension_semantics=("parallel", "arbitrary"),
            vmem_limit_bytes=32 * 1024 * 1024),
    )(*operands)


# --------------------------- synthetic vision tower -------------------------- #

CFG = dict(
    in_channels=4,     # small synthetic image channels
    expected_size=16,  # == self.expected_size of the PyTorch module (224 in real CLIP)
    patch=4,
    hidden=32,
    heads=4,
    mlp=64,
    layers=2,
)


def init_params(key, cfg):
    """PyTorch-layout parameters (conv weight (D,C,p,p); separate wq/wk/wv)."""
    D, C, p = cfg["hidden"], cfg["in_channels"], cfg["patch"]
    S = 1 + (cfg["expected_size"] // p) ** 2
    mlp = cfg["mlp"]

    def nrm(k, shape, scale=0.02):
        return (scale * jax.random.normal(k, shape)).astype(jnp.float32)

    keys = jax.random.split(key, 4 + cfg["layers"])
    params = {
        "patch_w": nrm(keys[0], (D, C, p, p)),
        "patch_b": jnp.zeros((D,), jnp.float32),
        "cls_emb": nrm(keys[1], (D,)),
        "pos_emb": nrm(keys[2], (S, D)),
        "pre_ln_g": jnp.ones((D,), jnp.float32),
        "pre_ln_b": jnp.zeros((D,), jnp.float32),
        "layers": [],
    }
    for li in range(cfg["layers"]):
        lk = jax.random.split(keys[4 + li], 8)
        params["layers"].append({
            "ln1_g": jnp.ones((D,), jnp.float32), "ln1_b": jnp.zeros((D,), jnp.float32),
            "wq": nrm(lk[0], (D, D)), "bq": jnp.zeros((D,), jnp.float32),
            "wk": nrm(lk[1], (D, D)), "bk": jnp.zeros((D,), jnp.float32),
            "wv": nrm(lk[2], (D, D)), "bv": jnp.zeros((D,), jnp.float32),
            "wo": nrm(lk[3], (D, D)), "bo": jnp.zeros((D,), jnp.float32),
            "ln2_g": jnp.ones((D,), jnp.float32), "ln2_b": jnp.zeros((D,), jnp.float32),
            "fc1_w": nrm(lk[4], (D, mlp)), "fc1_b": jnp.zeros((mlp,), jnp.float32),
            "fc2_w": nrm(lk[5], (mlp, D)), "fc2_b": jnp.zeros((D,), jnp.float32),
        })
    return params


def pack_params(params, cfg):
    """Pack PyTorch-layout params into the kernel layout: layers stacked on a
    leading axis (streamed per layer via the grid), fused QKV weight, bf16 matmul
    weights, f32 biases / LN params."""
    D, C, p, L = cfg["hidden"], cfg["in_channels"], cfg["patch"], cfg["layers"]
    mlp = cfg["mlp"]
    f32, bf16 = jnp.float32, jnp.bfloat16
    ly = params["layers"]
    return dict(
        w_pe=params["patch_w"].reshape(D, C * p * p).T.astype(bf16),          # (Cpp, D)
        b_pe=params["patch_b"].reshape(1, D).astype(f32),
        cls=params["cls_emb"].reshape(1, D).astype(f32),
        pos=params["pos_emb"].astype(f32),                                    # (S, D)
        preg=params["pre_ln_g"].reshape(1, D).astype(f32),
        preb=params["pre_ln_b"].reshape(1, D).astype(f32),
        ln1g=jnp.stack([l["ln1_g"] for l in ly]).reshape(L, 1, D).astype(f32),
        ln1b=jnp.stack([l["ln1_b"] for l in ly]).reshape(L, 1, D).astype(f32),
        wqkv=jnp.stack([jnp.concatenate([l["wq"], l["wk"], l["wv"]], axis=1)
                        for l in ly]).astype(bf16),                           # (L, D, 3D)
        bqkv=jnp.stack([jnp.concatenate([l["bq"], l["bk"], l["bv"]])
                        for l in ly]).reshape(L, 1, 3 * D).astype(f32),
        wo=jnp.stack([l["wo"] for l in ly]).astype(bf16),                     # (L, D, D)
        bo=jnp.stack([l["bo"] for l in ly]).reshape(L, 1, D).astype(f32),
        ln2g=jnp.stack([l["ln2_g"] for l in ly]).reshape(L, 1, D).astype(f32),
        ln2b=jnp.stack([l["ln2_b"] for l in ly]).reshape(L, 1, D).astype(f32),
        fc1w=jnp.stack([l["fc1_w"] for l in ly]).astype(bf16),                # (L, D, mlp)
        fc1b=jnp.stack([l["fc1_b"] for l in ly]).reshape(L, 1, mlp).astype(f32),
        fc2w=jnp.stack([l["fc2_w"] for l in ly]).astype(bf16),                # (L, mlp, D)
        fc2b=jnp.stack([l["fc2_b"] for l in ly]).reshape(L, 1, D).astype(f32),
    )


def image_encoder_forward(packed, x, cfg=CFG, batch_tile=None):
    """Mirrors ImageEncoder.forward."""
    expected = cfg["expected_size"]
    if x.shape[2] != expected or x.shape[3] != expected:
        x = pallas_bilinear_resize(x, expected, expected)
    # Vision tower + rank-3 CLS selection (features[:, 0, :]) in one pallas_call;
    # the kernel returns the CLS row as a (B, 1, D) slab.
    cls_features = fused_vision_tower(packed, x, cfg, batch_tile=batch_tile)
    return cls_features[:, 0, :]


# ------------------------------------ main ---------------------------------- #

if __name__ == "__main__":
    key = jax.random.PRNGKey(0)
    pkey, xkey = jax.random.split(key)
    params = init_params(pkey, CFG)
    packed = pack_params(params, CFG)

    # Input spatial dims (20x20) differ from expected_size (16) so the bilinear
    # resize path is exercised, exactly as in the PyTorch module.
    x = jax.random.normal(xkey, (2, CFG["in_channels"], 20, 20), dtype=jnp.float32)

    feats = image_encoder_forward(packed, x)
    feats = jax.block_until_ready(feats)

    assert feats.shape == (2, CFG["hidden"]), feats.shape
    assert jnp.all(jnp.isfinite(feats))
    print("KERNEL_OK")
</pallas_src>

<mosaic_0001>
module attributes {stable_mosaic.version = 11 : i64} {
  func.func @_bilinear_resize_kernel(%arg0: memref<2x4x20x20xf32, #tpu.memory_space<vmem>>, %arg1: memref<16x20xf32, #tpu.memory_space<vmem>>, %arg2: memref<16x20xf32, #tpu.memory_space<vmem>>, %arg3: memref<2x4x16x16xbf16, #tpu.memory_space<vmem>>) attributes {dimension_semantics = [], scalar_prefetch = 0 : i64, scratch_operands = 0 : i64, tpu.core_type = #tpu.core_type<tc>} {
    %c0 = arith.constant 0 : index
    %c0_0 = arith.constant 0 : index
    %c0_1 = arith.constant 0 : index
    %c0_2 = arith.constant 0 : index
    %0 = vector.load %arg0[%c0, %c0_0, %c0_1, %c0_2] : memref<2x4x20x20xf32, #tpu.memory_space<vmem>>, vector<2x4x20x20xf32>
    %1 = vector.shape_cast %0 : vector<2x4x20x20xf32> to vector<8x20x20xf32>
    %c0_3 = arith.constant 0 : index
    %c0_4 = arith.constant 0 : index
    %2 = vector.load %arg2[%c0_3, %c0_4] : memref<16x20xf32, #tpu.memory_space<vmem>>, vector<16x20xf32>
    "tpu.trace_start"() <{level = 10 : i32, message = "nhw,jw->nhj"}> : () -> ()
    %cst = arith.constant dense<0.000000e+00> : vector<8x20x16xf32>
    %3 = tpu.matmul %1, %2, %cst {dimension_numbers = #tpu.dot_dimension_numbers<[2], [1], [0, 1], [0], [0, 0, 0, 1, 1, 0], [], []>} : vector<8x20x20xf32>, vector<16x20xf32>, vector<8x20x16xf32> -> vector<8x20x16xf32>
    "tpu.trace_stop"() : () -> ()
    %c0_5 = arith.constant 0 : index
    %c0_6 = arith.constant 0 : index
    %4 = vector.load %arg1[%c0_5, %c0_6] : memref<16x20xf32, #tpu.memory_space<vmem>>, vector<16x20xf32>
    "tpu.trace_start"() <{level = 10 : i32, message = "nhj,ih->nij"}> : () -> ()
    %cst_7 = arith.constant dense<0.000000e+00> : vector<16x8x16xf32>
    %5 = tpu.matmul %4, %3, %cst_7 {dimension_numbers = #tpu.dot_dimension_numbers<[1], [1], [0], [0, 2], [0, 0, 1, 0, 1, 2], [], []>} : vector<16x20xf32>, vector<8x20x16xf32>, vector<16x8x16xf32> -> vector<16x8x16xf32>
    %6 = tpu.transpose %5, [1, 0, 2] : vector<16x8x16xf32> -> vector<8x16x16xf32>
    "tpu.trace_stop"() : () -> ()
    %7 = vector.shape_cast %6 : vector<8x16x16xf32> to vector<2x4x16x16xf32>
    %8 = arith.truncf %7 : vector<2x4x16x16xf32> to vector<2x4x16x16xbf16>
    %c0_8 = arith.constant 0 : index
    %c0_9 = arith.constant 0 : index
    %c0_10 = arith.constant 0 : index
    %c0_11 = arith.constant 0 : index
    %9 = vector.load %arg3[%c0_8, %c0_9, %c0_10, %c0_11] : memref<2x4x16x16xbf16, #tpu.memory_space<vmem>>, vector<2x4x16x16xbf16>
    tpu.vector_store %arg3[%c0_8, %c0_9, %c0_10, %c0_11], %8 {strides = array<i32>} : memref<2x4x16x16xbf16, #tpu.memory_space<vmem>>, vector<2x4x16x16xbf16>,
    return
  }
}

</mosaic_0001>

<bundles_post_ra>
// kernel: tpu_custom_call.1
= control target key start
LH: loop header
LB: loop body
LE: loop exit
PB: predicated region body
PF: predicated region fallthrough
CT: control target
= control target key end

     0   :  { %vm101_vm0 = vcmask 162816   ;;  %s2787_s0 = inlined_call_operand.vmem [shape: f32[2,4,20,20], index: 0, kind: input, shape index: {}]   ;;  %s2788_s1 = inlined_call_operand.vmem [shape: f32[16,20], index: 1, kind: input, shape index: {}]   ;;  %s2789_s2 = inlined_call_operand.vmem [shape: f32[16,20], index: 2, kind: input, shape index: {}]   ;;  %s2790_s3 = inlined_call_operand.hbm [shape: bf16[2,4,16,16], index: 3, kind: output, shape index: {}]  }
   0x1   :  { %v40_v0 = vld [vmem:[%s2789_s2 + $0x8] sm:$0xff]  ;;  %v39_v1 = vld [vmem:[%s2789_s2] sm:$0xff]  ;;  %v29_v4 = vld [vmem:[%s2787_s0 + $0x70] sm:$0xf] }
   0x2   :  { %v15_v2 = vld [vmem:[%s2787_s0] sm:$0xff]  ;;  %2192 = vmatprep.subr.msk.mxu0 %vm101_vm0, %v40_v0  ;;  %2235 = vmatprep.subr.msk.mxu1 %vm101_vm0, %v40_v0  ;;  %v30_v5 = vld [vmem:[%s2787_s0 + $0x78] sm:$0xff]  ;;  %v16_v10 = vld [vmem:[%s2787_s0 + $0x8] sm:$0xff] }
   0x3   :  { %v65_v3 = vcombine.high %v15_v2, %v15_v2  ;;  %v31_v6 = vld [vmem:[%s2787_s0 + $0x80] sm:$0xff]  ;;  %2193 = vmatpush3.xpose.msk.msra.mxu0 %vm101_vm0, %v40_v0  ;;  %2237 = vmatpush3.xpose.msk.msra.mxu1 %vm101_vm0, %v40_v0  ;;  %v75_v7 = vcombine.high %v30_v5, %v30_v5  ;;  %v93_v9 = vcombine.low %v29_v4, %v30_v5  ;;  %v17_v11 = vld [vmem:[%s2787_s0 + $0x10] sm:$0xf]  ;;  %v18_v12 = vld [vmem:[%s2787_s0 + $0x18] sm:$0xff] }
   0x4   :  { %v76_v8 = vcombine.high %v31_v6, %v31_v6  ;;  %2194 = vmatprep.subr.msk.mxu0 %vm101_vm0, %v39_v1  ;;  %2236 = vmatprep.subr.msk.mxu1 %vm101_vm0, %v39_v1  ;;  %v66_v14 = vcombine.high %v16_v10, %v16_v10  ;;  %v32_v15 = vld [vmem:[%s2787_s0 + $0x88] sm:$0xf]  ;;  %v19_v16 = vld [vmem:[%s2787_s0 + $0x20] sm:$0xff]  ;;  %v33_v17 = vld [vmem:[%s2787_s0 + $0x90] sm:$0xff]  ;;  %v67_v21 = vcombine.high %v18_v12, %v18_v12 }
   0x5   :  { %v81_v13 = vcombine.low %v15_v2, %v65_v3  ;;  %v94_v18 = vcombine.low %v75_v7, %v31_v6  ;;  %2214 = vmatprep.mubr.msk.f32.mxu1 %vm101_vm0, %v93_v9  ;;  %v34_v19 = vld [vmem:[%s2787_s0 + $0x98] sm:$0xff]  ;;  %v77_v22 = vcombine.high %v33_v17, %v33_v17  ;;  %v68_v23 = vcombine.high %v19_v16, %v19_v16  ;;  %v21_v24 = vld [vmem:[%s2787_s0 + $0x30] sm:$0xff]  ;;  %v20_v27 = vld [vmem:[%s2787_s0 + $0x28] sm:$0xf] }
   0x6   :  { %v82_v20 = vcombine.low %v16_v10, %v66_v14  ;;  %v83_v25 = vcombine.low %v17_v11, %v18_v12  ;;  %v95_v26 = vcombine.low %v76_v8, %v32_v15  ;;  %v78_v28 = vcombine.high %v34_v19, %v34_v19  ;;  %v36_v29 = vld [vmem:[%s2787_s0 + $0xa8] sm:$0xff]  ;;  %v22_v30 = vld [vmem:[%s2787_s0 + $0x38] sm:$0xff] }
   0x7   :  { %2196 = vmatprep.mubr.msk.f32.mxu0 %vm101_vm0, %v81_v13  ;;  %2195 = vmatpush3.xpose.msk.msra.mxu0 %vm101_vm0, %v39_v1  ;;  %v69_v31 = vcombine.high %v21_v24, %v21_v24 }
   0x8   :  { %2238 = vmatpush3.xpose.msk.msra.mxu1 %vm101_vm0, %v39_v1 }
   0x9   :  { %8 = vsyncpa [#allocation3], 0  ;;  %v84_v32 = vcombine.low %v67_v21, %v19_v16  ;;  %v96_v33 = vcombine.low %v33_v17, %v77_v22  ;;  %v85_v34 = vcombine.low %v68_v23, %v20_v27  ;;  %v97_v35 = vcombine.low %v34_v19, %v78_v28  ;;  %v35_v36 = vld [vmem:[%s2787_s0 + $0xa0] sm:$0xf]  ;;  %v37_v38 = vld [vmem:[%s2787_s0 + $0xb0] sm:$0xff]  ;;  %s2297_s8 = smov 80  }
   0xa   :  { %2197 = vmatmul.mubr.msk.f32.vlgmr.msra.gmra.mxu0 %vm101_vm0, %v82_v20  ;;  %v70_v37 = vcombine.high %v22_v30, %v22_v30  ;;  %v79_v39 = vcombine.high %v36_v29, %v36_v29  ;;  %v24_v40 = vld [vmem:[%s2787_s0 + $0x48] sm:$0xff]  ;;  %v86_v41 = vcombine.low %v21_v24, %v69_v31  ;;  %v98_v42 = vcombine.low %v35_v36, %v36_v29  ;;  %v23_v46 = vld [vmem:[%s2787_s0 + $0x40] sm:$0xf]  ;;  %v38_v47 = vld [vmem:[%s2787_s0 + $0xb8] sm:$0xf]  ;;  %s2298_s9 = smov 96  }
   0xb   :  { %2215 = vmatmul.mubr.msk.f32.vlgmr.msra.gmra.mxu1 %vm101_vm0, %v94_v18  ;;  %2199 = vmatprep.mubr.msk.f32.mxu0 %vm101_vm0, %v83_v25  ;;  %v80_v43 = vcombine.high %v37_v38, %v37_v38  ;;  %v25_v48 = vld [vmem:[%s2787_s0 + $0x50] sm:$0xff]  ;;  %v71_v49 = vcombine.high %v24_v40, %v24_v40  ;;  %v27_v50 = vld [vmem:[%s2787_s0 + $0x60] sm:$0xff]  ;;  %v88_v51 = vcombine.low %v23_v46, %v24_v40  ;;  %v26_v55 = vld [vmem:[%s2787_s0 + $0x58] sm:$0xf]  ;;  %v2293_v8 = vmov 1983009808  }
   0xc   :  { %2217 = vmatprep.mubr.msk.f32.mxu1 %vm101_vm0, %v95_v26  ;;  %v87_v44 = vcombine.low %v22_v30, %v70_v37  ;;  %v99_v45 = vcombine.low %v79_v39, %v37_v38  ;;  %v72_v53 = vcombine.high %v25_v48, %v25_v48  ;;  %v73_v56 = vcombine.high %v27_v50, %v27_v50  ;;  %v28_v57 = vld [vmem:[%s2787_s0 + $0x68] sm:$0xff]  ;;  %s2295_s0 = smov 64   ;;  %s2299_s10 = smov 112  }
   0xd   :  { %v100_v52 = vcombine.low %v80_v43, %v38_v47  ;;  %v89_v54 = vcombine.low %v71_v49, %v25_v48  ;;  %v74_v59 = vcombine.high %v28_v57, %v28_v57  ;;  %v377_v9 = vunpack.c.l.s4 %v2293_v8  ;;  %s2300_s11 = smov 48   ;;  %s2301_s12 = smov 32  }
   0xe   :  { %2200 = vmatmul.mubr.msk.f32.gmra.mxu0 %vm101_vm0, %v84_v32  ;;  %v90_v58 = vcombine.low %v72_v53, %v26_v55  ;;  %v91_v60 = vcombine.low %v27_v50, %v73_v56  ;;  %v379_v10 = vlaneseq  ;;  %v2294_v13 = vmov 1934713408   ;;  %s2302_s13 = smov 16  }
   0xf   :  { %2218 = vmatmul.mubr.msk.f32.gmra.mxu1 %vm101_vm0, %v96_v33  ;;  %2202 = vmatprep.mubr.msk.f32.mxu0 %vm101_vm0, %v85_v34  ;;  %v92_v61 = vcombine.low %v28_v57, %v74_v59  ;;  %v394_v14 = vunpack.c.l.s4 %v2294_v13  ;;  %v378_v17 = vunpack.c.0.s8 %v377_v9  ;;  %vm1179_vm1 = vcmask 261120  }
  0x10   :  { %2220 = vmatprep.mubr.msk.f32.mxu1 %vm101_vm0, %v97_v35  ;;  %v380_v18 = vshrl.u32 %v379_v10, 7  ;;  %vm1175_vm2 = vcmask 130048   ;;  %vm1183_vm3 = vcmask 392192   ;;  %vm1187_vm4 = vcmask 523264  }
  0x11   :  { %v395_v19 = vunpack.c.0.s8 %v394_v14  ;;  %vm1191_vm5 = vcmask 654336   ;;  %vm1195_vm6 = vcmask 785408   ;;  %vm1199_vm7 = vcmask 916480  }
  0x12   :  { %2203 = vmatmul.mubr.msk.f32.gmra.mxu0 %vm101_vm0, %v86_v41  ;;  %v2439_v23 = vsub.s32 %v378_v17, %v380_v18  ;;  %vm1300_vm8 = vcmask 1043456   ;;  %vm2031_vm9 = vcmask 125952  }
  0x13   :  { %2221 = vmatmul.mubr.msk.f32.gmra.mxu1 %vm101_vm0, %v98_v42  ;;  %2205 = vmatprep.mubr.msk.f32.mxu0 %vm101_vm0, %v87_v44  ;;  %v2441_v26 = vsub.s32 %v395_v19, %v380_v18 }
  0x14   :  { %2223 = vmatprep.mubr.msk.f32.mxu1 %vm101_vm0, %v99_v45 }
  0x16   :  { %2206 = vmatmul.mubr.msk.f32.gmra.mxu0 %vm101_vm0, %v88_v51 }
  0x17   :  { %2224 = vmatmul.mubr.msk.f32.gmra.mxu1 %vm101_vm0, %v100_v52  ;;  %2208 = vmatprep.mubr.msk.f32.mxu0 %vm101_vm0, %v89_v54 }
  0x1a   :  { %2209 = vmatmul.mubr.msk.f32.gmra.mxu0 %vm101_vm0, %v90_v58 }
  0x1b   :  { %2211 = vmatprep.mubr.msk.f32.mxu0 %vm101_vm0, %v91_v60 }
  0x1e   :  { %2212 = vmatmul.mubr.msk.f32.gmra.mxu0 %vm101_vm0, %v92_v61 }
  0xca   :  { %v2431_v62 = vpop.f32.mrf.mxu0 }
  0xcb   :  { %v2433_v63 = vpop.f32.mrf.mxu1 }
  0xcc   :  { %v214_v0 = vpop.f32.mrf.mxu0 }
  0xcd   :  { %v274_v1 = vpop.f32.mrf.mxu1 }
  0xce   :  { %v2201_v2 = vpop.f32.mrf.mxu0 }
  0xcf   :  { %v2435_v3 = vpop.f32.mrf.mxu1 }
  0xd0   :  { %v224_v4 = vpop.f32.mrf.mxu0 }
  0xd1   :  { %v284_v5 = vpop.f32.mrf.mxu1 }
  0xd2   :  { %v2204_v6 = vpop.f32.mrf.mxu0 }
  0xd3   :  { %v2222_v7 = vpop.f32.mrf.mxu1  ;;  %v375_v29 = vcombine.low %v214_v0, %v2204_v6  ;;  %v2088_v30 = vcombine.high %v214_v0, %v2204_v6 }
  0xd4   :  { %v234_v11 = vpop.f32.mrf.mxu0  ;;  %v681_v24 = vcombine.low %v274_v1, %v2222_v7  ;;  %v2087_v32 = vcombine.high %v274_v1, %v2222_v7 }
  0xd5   :  { %v2437_v12 = vpop.f32.mrf.mxu1  ;;  %v382_v44 = vrot.slane %v375_v29, %v2439_v23  ;;  %v450_v45 = vrot.slane %v2088_v30, %v2439_v23 }
  0xd6   :  { %v2207_v15 = vpop.f32.mrf.mxu0  ;;  %v688_v36 = vrot.slane %v681_v24, %v2439_v23  ;;  %v2455_v54 = vrot.slane %v2087_v32, %v2439_v23 }
  0xd7   :  { %v2225_v16 = vpop.f32.mrf.mxu1  ;;  %v2086_v25 = vcombine.high %v224_v4, %v2207_v15  ;;  %v647_v27 = vcombine.low %v224_v4, %v2207_v15 }
  0xd8   :  { %v244_v20 = vpop.f32.mrf.mxu0  ;;  %v2095_v21 = vcombine.high %v284_v5, %v2225_v16  ;;  %v621_v38 = vcombine.low %v284_v5, %v2225_v16 }
  0xd9   :  { %v511_v33 = vcombine.low %v2431_v62, %v244_v20  ;;  %v390_v37 = vrot.slane %v2086_v25, %v2439_v23  ;;  %v654_v40 = vrot.slane %v647_v27, %v2439_v23  ;;  %v2092_v47 = vcombine.high %v2431_v62, %v244_v20  ;;  %v304_v50 = vpop.f32.mrf.mxu1 }
  0xda   :  { %v2210_v22 = vpop.f32.mrf.mxu0  ;;  %v696_v31 = vrot.slane %v2095_v21, %v2439_v23  ;;  %v2459_v58 = vrot.slane %v621_v38, %v2439_v23  ;;  %v485_v0 = vcombine.low %v2433_v63, %v304_v50  ;;  %v2091_v1 = vcombine.high %v2433_v63, %v304_v50 }
  0xdb   :  { %v2094_v34 = vcombine.high %v234_v11, %v2210_v22  ;;  %v587_v39 = vcombine.low %v234_v11, %v2210_v22  ;;  %v518_v49 = vrot.slane %v511_v33, %v2439_v23  ;;  %v391_v55 = vcombine.low %v382_v44, %v390_v37 }
  0xdc   :  { %v254_v28 = vpop.f32.mrf.mxu0  ;;  %v697_v46 = vcombine.low %v688_v36, %v696_v31  ;;  %v698_v48 = vcombine.high %v688_v36, %v696_v31  ;;  %v392_v56 = vcombine.high %v382_v44, %v390_v37  ;;  %v586_v62 = vrot.slane %v2092_v47, %v2439_v23 }
  0xdd   :  { %v2090_v35 = vcombine.high %v2201_v2, %v254_v28  ;;  %v662_v41 = vrot.slane %v2094_v34, %v2439_v23  ;;  %v451_v42 = vcombine.low %v2201_v2, %v254_v28  ;;  %v594_v57 = vrot.slane %v587_v39, %v2439_v23 }
  0xde   :  { %v2213_v53 = vpop.f32.mrf.mxu0  ;;  %v705_v4 = vrot.slane %v697_v46, %v2441_v26  ;;  %v712_v5 = vrot.slane %v698_v48, %v2441_v26  ;;  %v2471_v9 = vrot.slane %v391_v55, %v2441_v26  ;;  %v2474_v10 = vrot.slane %v392_v56, %v2441_v26 }
  0xdf   :  { %v526_v43 = vrot.slane %v2090_v35, %v2439_v23  ;;  %v663_v51 = vcombine.low %v654_v40, %v662_v41  ;;  %v664_v52 = vcombine.high %v654_v40, %v662_v41  ;;  %v458_v59 = vrot.slane %v451_v42, %v2439_v23 }
  0xe0   :  { %v545_v2 = vcombine.low %v2213_v53, %v2437_v12  ;;  %v264_v8 = vpop.f32.mrf.mxu0  ;;  %v595_v11 = vcombine.low %v586_v62, %v594_v57  ;;  %v596_v13 = vcombine.high %v586_v62, %v594_v57  ;;  %v2093_v16 = vcombine.high %v2213_v53, %v2437_v12 }
  0xe1   :  { %v527_v60 = vcombine.low %v518_v49, %v526_v43  ;;  %v528_v61 = vcombine.high %v518_v49, %v526_v43  ;;  %v671_v6 = vrot.slane %v663_v51, %v2441_v26  ;;  %v678_v7 = vrot.slane %v664_v52, %v2441_v26 }
  0xe2   :  { %v459_v63 = vcombine.low %v450_v45, %v458_v59  ;;  %v2480_v17 = vrot.slane %v485_v0, %v2439_v23  ;;  %v560_v18 = vrot.slane %v2091_v1, %v2439_v23  ;;  %v552_v19 = vrot.slane %v545_v2, %v2439_v23 }
  0xe3   :  { %v535_v14 = vrot.slane %v527_v60, %v2441_v26  ;;  %v542_v15 = vrot.slane %v528_v61, %v2441_v26  ;;  %v409_v20 = vcombine.low %v264_v8, %v2435_v3  ;;  %v851_v21 = vcombine.low %v671_v6, %v678_v7 }
  0xe4   :  { %v2100_v22 = vcombine.high %v671_v6, %v678_v7  ;;  %v1021_v24 = vcombine.low %v705_v4, %v712_v5  ;;  %v2105_v25 = vcombine.high %v705_v4, %v712_v5  ;;  %v603_v27 = vrot.slane %v595_v11, %v2441_v26 }
  0xe5   :  { %v610_v28 = vrot.slane %v596_v13, %v2441_v26  ;;  %v460_v29 = vcombine.high %v450_v45, %v458_v59  ;;  %v2089_v12 = vcombine.high %v264_v8, %v2435_v3  ;;  %v715_v30 = vcombine.low %v2471_v9, %v2474_v10 }
  0xe6   :  { %v467_v31 = vrot.slane %v459_v63, %v2441_v26  ;;  %v783_v32 = vcombine.low %v535_v14, %v542_v15  ;;  %v620_v33 = vrot.slane %v2093_v16, %v2439_v23  ;;  %v2098_v34 = vcombine.high %v535_v14, %v542_v15 }
  0xe7   :  { %v561_v35 = vcombine.low %v552_v19, %v560_v18  ;;  %v562_v36 = vcombine.high %v552_v19, %v560_v18  ;;  %v416_v37 = vrot.slane %v409_v20, %v2439_v23  ;;  %v1028_v38 = vrot.slane %v1021_v24, %v2439_v23 }
  0xe8   :  { %v1036_v39 = vrot.slane %v2105_v25, %v2439_v23  ;;  %v2496_v40 = vrot.slane %v851_v21, %v2439_v23  ;;  %v866_v3 = vrot.slane %v2100_v22, %v2439_v23  ;;  %v817_v41 = vcombine.low %v603_v27, %v610_v28 }
  0xe9   :  { %v2099_v42 = vcombine.high %v603_v27, %v610_v28  ;;  %v474_v43 = vrot.slane %v460_v29, %v2441_v26  ;;  %v484_v44 = vrot.slane %v2089_v12, %v2439_v23  ;;  %v629_v45 = vcombine.low %v620_v33, %v2459_v58 }
  0xea   :  { %v630_v46 = vcombine.high %v620_v33, %v2459_v58  ;;  %v1037_v47 = vcombine.low %v1028_v38, %v1036_v39  ;;  %v1038_v48 = vcombine.high %v1028_v38, %v1036_v39  ;;  %v2504_v49 = vrot.slane %v561_v35, %v2441_v26 }
  0xeb   :  { %v576_v50 = vrot.slane %v562_v36, %v2441_v26  ;;  %v425_v51 = vcombine.low %v416_v37, %v2455_v54  ;;  %v426_v52 = vcombine.high %v416_v37, %v2455_v54  ;;  %v868_v55 = vcombine.high %v2496_v40, %v866_v3 }
  0xec   :  { %v1045_v53 = vrot.slane %v1037_v47, %v2441_v26  ;;  %v790_v56 = vrot.slane %v783_v32, %v2439_v23  ;;  %v798_v57 = vrot.slane %v2098_v34, %v2439_v23  ;;  %v493_v58 = vcombine.low %v484_v44, %v2480_v17 }
  0xed   :  { %v494_v59 = vcombine.high %v484_v44, %v2480_v17  ;;  %v824_v60 = vrot.slane %v817_v41, %v2439_v23  ;;  %v832_v61 = vrot.slane %v2099_v42, %v2439_v23  ;;  %v749_v62 = vcombine.low %v467_v31, %v474_v43 }
  0xee   :  { %v2097_v0 = vcombine.high %v467_v31, %v474_v43  ;;  %1122 = vrot.lane.b32.xlu1 %v1045_v53, %s2295_s0  ;;  %v2296_v54 = vmov 0.0   ;;  %v1052_v2 = vrot.slane %v1038_v48, %v2441_v26  ;;  %v2096_v4 = vcombine.high %v2471_v9, %v2474_v10 }
  0xef   :  { %v1053_v1 = vcombine.high %v1045_v53, %v2296_v54  ;;  %v637_v5 = vrot.slane %v629_v45, %v2441_v26  ;;  %v644_v6 = vrot.slane %v630_v46, %v2441_v26  ;;  %v953_v7 = vcombine.low %v2504_v49, %v576_v50 }
  0xf0   :  { %v433_v8 = vrot.slane %v425_v51, %v2441_v26  ;;  %v440_v11 = vrot.slane %v426_v52, %v2441_v26  ;;  %v882_v13 = vrot.slane %v868_v55, %v2441_v26  ;;  %v799_v63 = vcombine.low %v790_v56, %v798_v57 }
  0xf1   :  { %1138 = vrot.lane.b32.xlu0 %v1053_v1, %s2297_s8  ;;  %v501_v14 = vrot.slane %v493_v58, %v2441_v26  ;;  %v508_v15 = vrot.slane %v494_v59, %v2441_v26  ;;  %v833_v16 = vcombine.low %v824_v60, %v832_v61  ;;  %v867_v17 = vcombine.low %v2496_v40, %v866_v3 }
  0xf2   :  { %1154 = vrot.lane.b32.xlu1 %v1052_v2, %s2298_s9  ;;  %v1054_v18 = vcombine.high %v1052_v2, %v2296_v54  ;;  %v800_v19 = vcombine.high %v790_v56, %v798_v57  ;;  %v756_v20 = vrot.slane %v749_v62, %v2439_v23  ;;  %v764_v21 = vrot.slane %v2097_v0, %v2439_v23 }
  0xf3   :  { %v2103_v22 = vcombine.high %v2504_v49, %v576_v50  ;;  %v987_v24 = vcombine.low %v637_v5, %v644_v6  ;;  %v2104_v25 = vcombine.high %v637_v5, %v644_v6  ;;  %v834_v27 = vcombine.high %v824_v60, %v832_v61 }
  0xf4   :  { %v884_v28 = vcombine.high %v882_v13, %v2296_v54  ;;  %v2540_v29 = vrot.slane %v799_v63, %v2441_v26  ;;  %v722_v12 = vrot.slane %v715_v30, %v2439_v23  ;;  %v730_v31 = vrot.slane %v2096_v4, %v2439_v23 }
  0xf5   :  { %1170 = vrot.lane.b32.xlu0 %v1054_v18, %s2299_s10  ;;  %v885_v32 = vcombine.low %v433_v8, %v440_v11  ;;  %v2101_v33 = vcombine.high %v433_v8, %v440_v11  ;;  %v919_v34 = vcombine.low %v501_v14, %v508_v15  ;;  %v2548_v35 = vrot.slane %v867_v17, %v2441_v26 }
  0xf6   :  { %v2102_v36 = vcombine.high %v501_v14, %v508_v15  ;;  %1106 = vrot.lane.b32.xlu1 %v884_v28, %s2300_s11  ;;  %v2552_v37 = vrot.slane %v833_v16, %v2441_v26  ;;  %v814_v38 = vrot.slane %v800_v19, %v2441_v26  ;;  %v765_v39 = vcombine.low %v756_v20, %v764_v21 }
  0xf7   :  { %v848_v9 = vrot.slane %v834_v27, %v2441_v26  ;;  %v766_v10 = vcombine.high %v756_v20, %v764_v21  ;;  %v960_v30 = vrot.slane %v953_v7, %v2439_v23  ;;  %v968_v40 = vrot.slane %v2103_v22, %v2439_v23  ;;  %v373_v22 = vld [vmem:[%s2788_s1] sm:$0xff] }
  0xf8   :  { %v2107_v3 = vcombine.high %v2540_v29, %v2552_v37  ;;  %v731_v41 = vcombine.low %v722_v12, %v730_v31  ;;  %v994_v42 = vrot.slane %v987_v24, %v2439_v23  ;;  %v1002_v43 = vrot.slane %v2104_v25, %v2439_v23  ;;  %2232 = vmatprep.mubr.msk.f32.mxu1 %vm101_vm0, %v373_v22 }
  0xf9   :  { %1090 = vrot.lane.b32.xlu0 %v882_v13, %s2301_s12  ;;  %v883_v44 = vcombine.high %v2548_v35, %v2296_v54  ;;  %v2109_v45 = vcombine.high %v814_v38, %v848_v9  ;;  %v732_v46 = vcombine.high %v722_v12, %v730_v31  ;;  %v2567_v47 = vrot.slane %v765_v39, %v2441_v26 }
  0xfa   :  { %1072 = vrot.lane.b32.xlu1 %v2107_v3, %s2302_s13  ;;  %v1060_v48 = vcombine.low %v2540_v29, %v2552_v37  ;;  %v780_v49 = vrot.slane %v766_v10, %v2441_v26  ;;  %v969_v50 = vcombine.low %v960_v30, %v968_v40  ;;  %v892_v51 = vrot.slane %v885_v32, %v2439_v23 }
  0xfb   :  { %v900_v52 = vrot.slane %v2101_v33, %v2439_v23  ;;  %v2576_v53 = vrot.slane %v731_v41, %v2441_v26  ;;  %v1003_v55 = vcombine.low %v994_v42, %v1002_v43  ;;  %v926_v56 = vrot.slane %v919_v34, %v2439_v23 }
  0xfc   :  { %v934_v57 = vrot.slane %v2102_v36, %v2439_v23  ;;  %v1085_v58 = vcombine.low %v814_v38, %v848_v9  ;;  %v746_v59 = vrot.slane %v732_v46, %v2441_v26  ;;  %v977_v61 = vrot.slane %v969_v50, %v2441_v26 }
  0xfd   :  { %1074 = vrot.lane.b32.xlu0 %v883_v44, %s2302_s13  ;;  %v1059_v60 = vcombine.low %v2576_v53, %v2567_v47  ;;  %v1011_v0 = vrot.slane %v1003_v55, %v2441_v26  ;;  %v901_v1 = vcombine.low %v892_v51, %v900_v52  ;;  %v2106_v4 = vcombine.high %v2576_v53, %v2567_v47 }
  0xfe   :  { %1104 = vrot.lane.b32.xlu1 %v2109_v45, %s2300_s11  ;;  %v1084_v62 = vcombine.low %v746_v59, %v780_v49  ;;  %v935_v2 = vcombine.low %v926_v56, %v934_v57  ;;  %v2108_v8 = vcombine.high %v746_v59, %v780_v49  ;;  %v970_v11 = vcombine.high %v960_v30, %v968_v40 }
  0xff   :  { %v2111_v5 = vcombine.high %v977_v61, %v1011_v0  ;;  %v909_v6 = vrot.slane %v901_v1, %v2441_v26  ;;  %v1004_v13 = vcombine.high %v994_v42, %v1002_v43  ;;  %v902_v14 = vcombine.high %v892_v51, %v900_v52 }
 0x100   :  { %v943_v7 = vrot.slane %v935_v2, %v2441_v26  ;;  %v936_v15 = vcombine.high %v926_v56, %v934_v57  ;;  %v1117_v16 = vcombine.low %v977_v61, %v1011_v0  ;;  %v984_v17 = vrot.slane %v970_v11, %v2441_v26 }
 0x101   :  { %1088 = vrot.lane.b32.xlu0 %v1085_v58, %s2301_s12  ;;  %v1018_v18 = vrot.slane %v1004_v13, %v2441_v26  ;;  %v916_v20 = vrot.slane %v902_v14, %v2441_v26  ;;  %v1203_v25 = vcombine.low %v2296_v54, %v2296_v54  ;;  %v1204_v27 = vcombine.high %v2296_v54, %v2296_v54 }
 0x102   :  { %1086 = vrot.lane.b32.xlu1 %v1084_v62, %s2301_s12  ;;  %v1116_v63 = vcombine.low %v909_v6, %v943_v7  ;;  %v2110_v19 = vcombine.high %v909_v6, %v943_v7  ;;  %v950_v21 = vrot.slane %v936_v15, %v2441_v26 }
 0x103   :  { %v1149_v24 = vcombine.low %v984_v17, %v1018_v18  ;;  %v1211_v12 = vrot.slane %v1203_v25, %v2439_v23  ;;  %v1218_v31 = vrot.slane %v1204_v27, %v2439_v23  ;;  %v2113_v32 = vcombine.high %v984_v17, %v1018_v18 }
 0x104   :  { %v1148_v28 = vcombine.low %v916_v20, %v950_v21  ;;  %v2112_v39 = vcombine.high %v916_v20, %v950_v21 }
 0x105   :  { %1070 = vrot.lane.b32.xlu0 %v2106_v4, %s2302_s13  ;;  %v1219_v33 = vcombine.low %v1211_v12, %v1211_v12  ;;  %v1220_v34 = vcombine.high %v1211_v12, %v1211_v12  ;;  %v1235_v54 = vcombine.low %v1218_v31, %v1218_v31  ;;  %v1236_v10 = vcombine.high %v1218_v31, %v1218_v31  ;;  %v374_v31 = vld [vmem:[%s2788_s1 + $0x8] sm:$0xff]  ;;  %s2303_s1 = smov [#allocation2]  }
 0x106   :  { %1136 = vrot.lane.b32.xlu1 %v2111_v5, %s2297_s8  ;;  %s2053_s18 = sshll.u32 %s2303_s1, 4  ;;  %s2054_s18 = int_to_ptr.vmem [resolvable:$true] %s2053_s18 }
 0x107   :  { %v2616_v36 = vrot.slane %v1219_v33, %v2441_v26  ;;  %v1234_v38 = vrot.slane %v1220_v34, %v2441_v26  ;;  %v1243_v3 = vrot.slane %v1235_v54, %v2441_v26  ;;  %v1250_v43 = vrot.slane %v1236_v10, %v2441_v26  ;;  %s2271_s19 = scalar_lea.vmem %s2054_s18, 1024  ;;  %p2276_p1 = scmp.lt.s32.totalorder %s2054_s18, %s2054_s18 }
 0x108   :  { %p2272_p0 = scmp.ne.s32.totalorder %s2054_s18, %s2271_s19  ;;  %p2277_p2 = scmp.lt.s32.totalorder %s2271_s19, %s2271_s19 }
 0x109   :  { %1102 = vrot.lane.b32.xlu0 %v2108_v8, %s2300_s11  ;;  %v1252_v9 = vcombine.high %v2616_v36, %v2616_v36  ;;  %v1253_v30 = vcombine.low %v1234_v38, %v1234_v38  ;;  %v1254_v40 = vcombine.high %v1234_v38, %v1234_v38  ;;  %v1255_v41 = vcombine.low %v1243_v3, %v1243_v3 }
 0x10a   :  { %1118 = vrot.lane.b32.xlu1 %v1116_v63, %s2295_s0  ;;  %v1256_v42 = vcombine.high %v1243_v3, %v1243_v3  ;;  %v1257_v44 = vcombine.low %v1250_v43, %v1250_v43  ;;  %v1258_v45 = vcombine.high %v1250_v43, %v1250_v43  ;;  %v1251_v47 = vcombine.low %v2616_v36, %v2616_v36  ;;  %p2278_p3 = por %p2277_p2, %p2276_p1 }
 0x10c   :  { %p2279_p4 = pnand %p2278_p3, %p2272_p0 }
 0x10d   :  { %1120 = vrot.lane.b32.xlu0 %v1117_v16, %s2295_s0 }
 0x10e   :  { %1134 = vrot.lane.b32.xlu1 %v2110_v19, %s2297_s8 }
 0x111   :  { %1152 = vrot.lane.b32.xlu0 %v1149_v24, %s2298_s9 }
 0x112   :  { %1150 = vrot.lane.b32.xlu1 %v1148_v28, %s2298_s9 }
 0x115   :  { %1168 = vrot.lane.b32.xlu0 %v2113_v32, %s2299_s10 }
 0x116   :  { %1260 = vrot.lane.b32.xlu1 %v1252_v9, %s2302_s13 }
 0x119   :  { %1166 = vrot.lane.b32.xlu0 %v2112_v39, %s2299_s10 }
 0x11a   :  { %1268 = vrot.lane.b32.xlu1 %v1254_v40, %s2300_s11 }
 0x11d   :  { %1264 = vrot.lane.b32.xlu0 %v1253_v30, %s2301_s12 }
 0x11e   :  { %1276 = vrot.lane.b32.xlu1 %v1256_v42, %s2297_s8 }
 0x121   :  { %1272 = vrot.lane.b32.xlu0 %v1255_v41, %s2295_s0 }
 0x122   :  { %1284 = vrot.lane.b32.xlu1 %v1258_v45, %s2299_s10 }
 0x125   :  { %1280 = vrot.lane.b32.xlu0 %v1257_v44, %s2298_s9 }
 0x160   :  { %v1123_v46 = vpop.permute.xlu1 %1122 }
 0x163   :  { %v1139_v49 = vpop.permute.xlu0 %1138 }
 0x164   :  { %v1155_v50 = vpop.permute.xlu1 %1154 }
 0x167   :  { %v1171_v51 = vpop.permute.xlu0 %1170 }
 0x168   :  { %v1107_v52 = vpop.permute.xlu1 %1106 }
 0x16b   :  { %v1091_v55 = vpop.permute.xlu0 %1090 }
 0x16c   :  { %v1073_v56 = vpop.permute.xlu1 %1072 }
 0x16d   :  { %v1177_v13 = vsel %vm1175_vm2, %v1060_v48, %v1073_v56 }
 0x16f   :  { %v1075_v57 = vpop.permute.xlu0 %1074 }
 0x170   :  { %v1178_v58 = vsel %vm1175_vm2, %v2548_v35, %v1075_v57  ;;  %v1105_v61 = vpop.permute.xlu1 %1104 }
 0x171   :  { %v1182_v59 = vsel %vm1179_vm1, %v1178_v58, %v1091_v55 }
 0x172   :  { %v1186_v62 = vsel %vm1183_vm3, %v1182_v59, %v1107_v52 }
 0x173   :  { %v1190_v0 = vsel %vm1187_vm4, %v1186_v62, %v1123_v46  ;;  %v1089_v1 = vpop.permute.xlu0 %1088 }
 0x174   :  { %v1194_v2 = vsel %vm1191_vm5, %v1190_v0, %v1139_v49  ;;  %v1087_v4 = vpop.permute.xlu1 %1086  ;;  %v1181_v63 = vsel %vm1179_vm1, %v1177_v13, %v1089_v1 }
 0x175   :  { %v1198_v5 = vsel %vm1195_vm6, %v1194_v2, %v1155_v50  ;;  %v1185_v17 = vsel %vm1183_vm3, %v1181_v63, %v1105_v61 }
 0x176   :  { %v1202_v6 = vsel %vm1199_vm7, %v1198_v5, %v1171_v51 }
 0x177   :  { %2226 = vmatprep.subr.msk.mxu1 %vm1300_vm8, %v1202_v6  ;;  %v1071_v35 = vpop.permute.xlu0 %1070 }
 0x178   :  { %2227 = vmatpush3.msk.msra.mxu1 %vm1300_vm8, %v1202_v6  ;;  %v1137_v7 = vpop.permute.xlu1 %1136  ;;  %v1176_v16 = vsel %vm1175_vm2, %v1059_v60, %v1071_v35 }
 0x179   :  { %v1180_v20 = vsel %vm1179_vm1, %v1176_v16, %v1087_v4 }
 0x17b   :  { %v1103_v8 = vpop.permute.xlu0 %1102 }
 0x17c   :  { %v1119_v11 = vpop.permute.xlu1 %1118  ;;  %v1184_v29 = vsel %vm1183_vm3, %v1180_v20, %v1103_v8 }
 0x17d   :  { %v1188_v53 = vsel %vm1187_vm4, %v1184_v29, %v1119_v11 }
 0x17f   :  { %v1121_v14 = vpop.permute.xlu0 %1120 }
 0x180   :  { %v1135_v15 = vpop.permute.xlu1 %1134  ;;  %v1189_v18 = vsel %vm1187_vm4, %v1185_v17, %v1121_v14 }
 0x181   :  { %v1193_v37 = vsel %vm1191_vm5, %v1189_v18, %v1137_v7  ;;  %v1192_v60 = vsel %vm1191_vm5, %v1188_v53, %v1135_v15 }
 0x183   :  { %v1153_v19 = vpop.permute.xlu0 %1152 }
 0x184   :  { %v1197_v48 = vsel %vm1195_vm6, %v1193_v37, %v1153_v19  ;;  %v1151_v21 = vpop.permute.xlu1 %1150 }
 0x185   :  { %v1196_v25 = vsel %vm1195_vm6, %v1192_v60, %v1151_v21 }
 0x187   :  { %v1169_v22 = vpop.permute.xlu0 %1168 }
 0x188   :  { %v1201_v24 = vsel %vm1199_vm7, %v1197_v48, %v1169_v22  ;;  %v1261_v28 = vpop.permute.xlu1 %1260 }
 0x189   :  { %2228 = vmatprep.subr.mxu1 %v1201_v24  ;;  %v1287_v32 = vsel %vm1175_vm2, %v1251_v47, %v1261_v28 }
 0x18a   :  { %2229 = vmatpush3.msra.mxu1 %v1201_v24 }
 0x18b   :  { %v1167_v27 = vpop.permute.xlu0 %1166 }
 0x18c   :  { %v1200_v12 = vsel %vm1199_vm7, %v1196_v25, %v1167_v27  ;;  %v1269_v34 = vpop.permute.xlu1 %1268 }
 0x18d   :  { %2230 = vmatprep.subr.mxu1 %v1200_v12 }
 0x18e   :  { %2231 = vmatpush3.msra.mxu1 %v1200_v12 }
 0x18f   :  { %2233 = vmatmul.mubr.msk.f32.vlgmr.msra.gmra.mxu1 %vm101_vm0, %v374_v31  ;;  %v1265_v33 = vpop.permute.xlu0 %1264 }
 0x190   :  { %v1288_v36 = vsel %vm1179_vm1, %v1287_v32, %v1265_v33  ;;  %v1277_v39 = vpop.permute.xlu1 %1276 }
 0x191   :  { %v1289_v38 = vsel %vm1183_vm3, %v1288_v36, %v1269_v34 }
 0x193   :  { %v1273_v54 = vpop.permute.xlu0 %1272 }
 0x194   :  { %v1290_v9 = vsel %vm1187_vm4, %v1289_v38, %v1273_v54  ;;  %v1285_v40 = vpop.permute.xlu1 %1284 }
 0x195   :  { %v1291_v10 = vsel %vm1191_vm5, %v1290_v9, %v1277_v39 }
 0x197   :  { %v1281_v30 = vpop.permute.xlu0 %1280 }
 0x198   :  { %v1292_v3 = vsel %vm1195_vm6, %v1291_v10, %v1281_v30 }
 0x199   :  { %v1293_v41 = vsel %vm1199_vm7, %v1292_v3, %v1285_v40 }
 0x24f   :  { %v2234_v42 = vpop.f32.mrf.mxu1 }
 0x250   :  { %v1376_v43 = vadd.f32 %v2234_v42, %v1293_v41 }
 0x251   :  { %v1370_v44 = vpop.f32.mrf.mxu1 }
 0x252   :  { %v1371_v45 = vadd.f32 %v1370_v44, %v1293_v41  ;;  %1383 = vrot.lane.b32.xlu1 %v1376_v43, %s2299_s10 }
 0x254   :  { %1381 = vrot.lane.b32.xlu0 %v1371_v45, %s2299_s10 }
 0x256   :  { %1389 = vrot.lane.b32.xlu1 %v1376_v43, %s2298_s9 }
 0x258   :  { %1387 = vrot.lane.b32.xlu0 %v1371_v45, %s2298_s9 }
 0x25a   :  { %1395 = vrot.lane.b32.xlu1 %v1376_v43, %s2297_s8 }
 0x25c   :  { %1393 = vrot.lane.b32.xlu0 %v1371_v45, %s2297_s8 }
 0x25e   :  { %1401 = vrot.lane.b32.xlu1 %v1376_v43, %s2295_s0 }
 0x260   :  { %1399 = vrot.lane.b32.xlu0 %v1371_v45, %s2295_s0 }
 0x262   :  { %1407 = vrot.lane.b32.xlu1 %v1376_v43, %s2300_s11 }
 0x264   :  { %1405 = vrot.lane.b32.xlu0 %v1371_v45, %s2300_s11 }
 0x266   :  { %1413 = vrot.lane.b32.xlu1 %v1376_v43, %s2301_s12 }
 0x268   :  { %1411 = vrot.lane.b32.xlu0 %v1371_v45, %s2301_s12 }
 0x26a   :  { %1419 = vrot.lane.b32.xlu1 %v1376_v43, %s2302_s13 }
 0x26c   :  { %1417 = vrot.lane.b32.xlu0 %v1371_v45, %s2302_s13 }
 0x2c4   :  { %v1384_v46 = vpop.permute.xlu1 %1383 }
 0x2c6   :  { %v1382_v49 = vpop.permute.xlu0 %1381 }
 0x2c8   :  { %v1390_v50 = vpop.permute.xlu1 %1389 }
 0x2c9   :  { %v1559_v51 = vcombine.low %v1376_v43, %v1390_v50  ;;  %v1560_v52 = vcombine.high %v1376_v43, %v1390_v50 }
 0x2ca   :  { %v1388_v55 = vpop.permute.xlu0 %1387 }
 0x2cb   :  { %v1567_v59 = vrot.slane %v1559_v51, %v2439_v23  ;;  %v1574_v61 = vrot.slane %v1560_v52, %v2439_v23  ;;  %v1423_v62 = vcombine.low %v1371_v45, %v1388_v55  ;;  %v1424_v0 = vcombine.high %v1371_v45, %v1388_v55 }
 0x2cc   :  { %v1396_v56 = vpop.permute.xlu1 %1395 }
 0x2cd   :  { %v1575_v57 = vcombine.low %v1384_v46, %v1396_v56  ;;  %v1576_v58 = vcombine.high %v1384_v46, %v1396_v56  ;;  %v1431_v63 = vrot.slane %v1423_v62, %v2439_v23  ;;  %v1438_v14 = vrot.slane %v1424_v0, %v2439_v23 }
 0x2ce   :  { %v1394_v1 = vpop.permute.xlu0 %1393 }
 0x2cf   :  { %v1583_v2 = vrot.slane %v1575_v57, %v2439_v23  ;;  %v1590_v4 = vrot.slane %v1576_v58, %v2439_v23  ;;  %v1439_v5 = vcombine.low %v1382_v49, %v1394_v1  ;;  %v1440_v6 = vcombine.high %v1382_v49, %v1394_v1 }
 0x2d0   :  { %v2690_v35 = vpop.permute.xlu1 %1401 }
 0x2d1   :  { %v1623_v7 = vcombine.low %v1567_v59, %v1583_v2  ;;  %v1624_v8 = vcombine.high %v1567_v59, %v1583_v2  ;;  %v1639_v11 = vcombine.low %v1574_v61, %v1590_v4  ;;  %v1640_v13 = vcombine.high %v1574_v61, %v1590_v4 }
 0x2d2   :  { %v1447_v15 = vrot.slane %v1439_v5, %v2439_v23  ;;  %v1454_v16 = vrot.slane %v1440_v6, %v2439_v23  ;;  %v2696_v17 = vpop.permute.xlu0 %1399 }
 0x2d3   :  { %v1631_v18 = vrot.slane %v1623_v7, %v2441_v26  ;;  %v1638_v19 = vrot.slane %v1624_v8, %v2441_v26  ;;  %v1647_v20 = vrot.slane %v1639_v11, %v2441_v26  ;;  %v1654_v29 = vrot.slane %v1640_v13, %v2441_v26 }
 0x2d4   :  { %v1487_v37 = vcombine.low %v1431_v63, %v1447_v15  ;;  %v1488_v48 = vcombine.high %v1431_v63, %v1447_v15  ;;  %v1503_v21 = vcombine.low %v1438_v14, %v1454_v16  ;;  %v1504_v22 = vcombine.high %v1438_v14, %v1454_v16  ;;  %v2702_v25 = vpop.permute.xlu1 %1407 }
 0x2d5   :  { %v2125_v24 = vcombine.low %v1631_v18, %v1638_v19  ;;  %v2127_v47 = vcombine.high %v1631_v18, %v1638_v19  ;;  %v2129_v53 = vcombine.low %v1647_v20, %v1654_v29  ;;  %v2131_v60 = vcombine.high %v1647_v20, %v1654_v29 }
 0x2d6   :  { %v1495_v27 = vrot.slane %v1487_v37, %v2441_v26  ;;  %v1502_v28 = vrot.slane %v1488_v48, %v2441_v26  ;;  %v1511_v12 = vrot.slane %v1503_v21, %v2441_v26  ;;  %v1518_v31 = vrot.slane %v1504_v22, %v2441_v26  ;;  %v2708_v32 = vpop.permute.xlu0 %1405 }
 0x2d7   :  { %v1839_v33 = vrot.slane %v2125_v24, %v2439_v23  ;;  %v1855_v34 = vrot.slane %v2127_v47, %v2439_v23  ;;  %v1871_v36 = vrot.slane %v2129_v53, %v2439_v23  ;;  %v1887_v38 = vrot.slane %v2131_v60, %v2439_v23 }
 0x2d8   :  { %v2117_v54 = vcombine.low %v1495_v27, %v1502_v28  ;;  %v2119_v39 = vcombine.high %v1495_v27, %v1502_v28  ;;  %v2121_v9 = vcombine.low %v1511_v12, %v1518_v31  ;;  %v2123_v10 = vcombine.high %v1511_v12, %v1518_v31  ;;  %v1414_v52 = vpop.permute.xlu1 %1413 }
 0x2d9   :  { %v1895_v30 = vcombine.low %v1839_v33, %v1855_v34  ;;  %v1896_v40 = vcombine.high %v1839_v33, %v1855_v34  ;;  %v1927_v3 = vcombine.low %v1871_v36, %v1887_v38  ;;  %v1928_v41 = vcombine.high %v1871_v36, %v1887_v38 }
 0x2da   :  { %v1703_v42 = vrot.slane %v2117_v54, %v2439_v23  ;;  %v1719_v43 = vrot.slane %v2119_v39, %v2439_v23  ;;  %v1735_v44 = vrot.slane %v2121_v9, %v2439_v23  ;;  %v1751_v45 = vrot.slane %v2123_v10, %v2439_v23  ;;  %v1412_v55 = vpop.permute.xlu0 %1411 }
 0x2db   :  { %v1903_v46 = vrot.slane %v1895_v30, %v2441_v26  ;;  %v1910_v49 = vrot.slane %v1896_v40, %v2441_v26  ;;  %v1935_v50 = vrot.slane %v1927_v3, %v2441_v26  ;;  %v1942_v51 = vrot.slane %v1928_v41, %v2441_v26 }
 0x2dc   :  { %v1759_v56 = vcombine.low %v1703_v42, %v1719_v43  ;;  %v1760_v57 = vcombine.high %v1703_v42, %v1719_v43  ;;  %v1791_v58 = vcombine.low %v1735_v44, %v1751_v45  ;;  %v1792_v59 = vcombine.high %v1735_v44, %v1751_v45  ;;  %v1420_v20 = vpop.permute.xlu1 %1419 }
 0x2dd   :  { %v1959_v61 = vcombine.low %v1903_v46, %v1935_v50  ;;  %v1960_v62 = vcombine.high %v1903_v46, %v1935_v50  ;;  %v1961_v0 = vcombine.low %v1910_v49, %v1942_v51  ;;  %v1962_v1 = vcombine.high %v1910_v49, %v1942_v51 }
 0x2de   :  { %v1767_v2 = vrot.slane %v1759_v56, %v2441_v26  ;;  %v1774_v4 = vrot.slane %v1760_v57, %v2441_v26  ;;  %v1799_v5 = vrot.slane %v1791_v58, %v2441_v26  ;;  %v1806_v6 = vrot.slane %v1792_v59, %v2441_v26  ;;  %v1418_v29 = vpop.permute.xlu0 %1417 }
 0x2df   :  { %v2150_v7 = vpack.c.bf16 %v1959_v61, %v1959_v61  ;;  %v2152_v8 = vpack.c.bf16 %v1960_v62, %v1960_v62  ;;  %v2154_v11 = vpack.c.bf16 %v1961_v0, %v1961_v0  ;;  %v2156_v13 = vpack.c.bf16 %v1962_v1, %v1962_v1 }
 0x2e0   :  { %v1823_v63 = vcombine.low %v1767_v2, %v1799_v5  ;;  %v1824_v14 = vcombine.high %v1767_v2, %v1799_v5  ;;  %v1825_v15 = vcombine.low %v1774_v4, %v1806_v6  ;;  %v1826_v16 = vcombine.high %v1774_v4, %v1806_v6 }
 0x2e1   :  { %2033 = vst.msk [vmem:[#allocation2 + $0x4] sm:$0xf] %vm2031_vm9, %v2150_v7  ;;  %2035 = vst.msk [vmem:[#allocation2 + $0xc] sm:$0xf] %vm2031_vm9, %v2152_v8  ;;  %v1591_v18 = vcombine.low %v2690_v35, %v1414_v52  ;;  %v1592_v19 = vcombine.high %v2690_v35, %v1414_v52  ;;  %v1455_v24 = vcombine.low %v2696_v17, %v1412_v55 }
 0x2e2   :  { %2037 = vst.msk [vmem:[#allocation2 + $0x14] sm:$0xf] %vm2031_vm9, %v2154_v11  ;;  %2039 = vst.msk [vmem:[#allocation2 + $0x1c] sm:$0xf] %vm2031_vm9, %v2156_v13  ;;  %v2149_v37 = vpack.c.bf16 %v1823_v63, %v1823_v63  ;;  %v2151_v48 = vpack.c.bf16 %v1824_v14, %v1824_v14  ;;  %v2153_v21 = vpack.c.bf16 %v1825_v15, %v1825_v15 }
 0x2e3   :  { %v2155_v22 = vpack.c.bf16 %v1826_v16, %v1826_v16  ;;  %v1456_v47 = vcombine.high %v2696_v17, %v1412_v55  ;;  %v1607_v35 = vcombine.low %v2702_v25, %v1420_v20  ;;  %v1608_v53 = vcombine.high %v2702_v25, %v1420_v20 }
 0x2e4   :  { %2032 = vst.msk [vmem:[#allocation2] sm:$0xf] %vm2031_vm9, %v2149_v37  ;;  %2034 = vst.msk [vmem:[#allocation2 + $0x8] sm:$0xf] %vm2031_vm9, %v2151_v48  ;;  %v1471_v60 = vcombine.low %v2708_v32, %v1418_v29  ;;  %v1472_v27 = vcombine.high %v2708_v32, %v1418_v29  ;;  %v1599_v28 = vrot.slane %v1591_v18, %v2439_v23 }
 0x2e5   :  { %2036 = vst.msk [vmem:[#allocation2 + $0x10] sm:$0xf] %vm2031_vm9, %v2153_v21  ;;  %2038 = vst.msk [vmem:[#allocation2 + $0x18] sm:$0xf] %vm2031_vm9, %v2155_v22  ;;  %v1606_v17 = vrot.slane %v1592_v19, %v2439_v23  ;;  %v1615_v12 = vrot.slane %v1607_v35, %v2439_v23  ;;  %v1622_v31 = vrot.slane %v1608_v53, %v2439_v23 }
 0x2e6   :  { %v1479_v33 = vrot.slane %v1471_v60, %v2439_v23  ;;  %v1486_v34 = vrot.slane %v1472_v27, %v2439_v23  ;;  %v1463_v36 = vrot.slane %v1455_v24, %v2439_v23  ;;  %v1470_v25 = vrot.slane %v1456_v47, %v2439_v23 }
 0x2e7   :  { %v1655_v38 = vcombine.low %v1599_v28, %v1615_v12  ;;  %v1656_v54 = vcombine.high %v1599_v28, %v1615_v12  ;;  %v1671_v39 = vcombine.low %v1606_v17, %v1622_v31  ;;  %v1672_v32 = vcombine.high %v1606_v17, %v1622_v31 }
 0x2e8   :  { %v1519_v9 = vcombine.low %v1463_v36, %v1479_v33  ;;  %v1520_v10 = vcombine.high %v1463_v36, %v1479_v33  ;;  %v1535_v30 = vcombine.low %v1470_v25, %v1486_v34  ;;  %v1536_v40 = vcombine.high %v1470_v25, %v1486_v34 }
 0x2e9   :  { %v1663_v3 = vrot.slane %v1655_v38, %v2441_v26  ;;  %v1670_v41 = vrot.slane %v1656_v54, %v2441_v26  ;;  %v1679_v42 = vrot.slane %v1671_v39, %v2441_v26  ;;  %v1686_v43 = vrot.slane %v1672_v32, %v2441_v26 }
 0x2ea   :  { %v1527_v44 = vrot.slane %v1519_v9, %v2441_v26  ;;  %v1534_v45 = vrot.slane %v1520_v10, %v2441_v26  ;;  %v1543_v46 = vrot.slane %v1535_v30, %v2441_v26  ;;  %v1550_v49 = vrot.slane %v1536_v40, %v2441_v26 }
 0x2eb   :  { %v2126_v50 = vcombine.low %v1663_v3, %v1670_v41  ;;  %v2128_v51 = vcombine.high %v1663_v3, %v1670_v41  ;;  %v2130_v52 = vcombine.low %v1679_v42, %v1686_v43  ;;  %v2132_v55 = vcombine.high %v1679_v42, %v1686_v43 }
 0x2ec   :  { %v2118_v56 = vcombine.low %v1527_v44, %v1534_v45  ;;  %v2120_v57 = vcombine.high %v1527_v44, %v1534_v45  ;;  %v2122_v58 = vcombine.low %v1543_v46, %v1550_v49  ;;  %v2124_v59 = vcombine.high %v1543_v46, %v1550_v49 }
 0x2ed   :  { %v1846_v61 = vrot.slane %v2126_v50, %v2439_v23  ;;  %v1862_v62 = vrot.slane %v2128_v51, %v2439_v23  ;;  %v1878_v0 = vrot.slane %v2130_v52, %v2439_v23  ;;  %v1894_v1 = vrot.slane %v2132_v55, %v2439_v23 }
 0x2ee   :  { %v1710_v2 = vrot.slane %v2118_v56, %v2439_v23  ;;  %v1726_v4 = vrot.slane %v2120_v57, %v2439_v23  ;;  %v1742_v5 = vrot.slane %v2122_v58, %v2439_v23  ;;  %v1758_v6 = vrot.slane %v2124_v59, %v2439_v23 }
 0x2ef   :  { %v1911_v7 = vcombine.low %v1846_v61, %v1862_v62  ;;  %v1912_v8 = vcombine.high %v1846_v61, %v1862_v62  ;;  %v1943_v11 = vcombine.low %v1878_v0, %v1894_v1  ;;  %v1944_v13 = vcombine.high %v1878_v0, %v1894_v1 }
 0x2f0   :  { %v1775_v63 = vcombine.low %v1710_v2, %v1726_v4  ;;  %v1776_v14 = vcombine.high %v1710_v2, %v1726_v4  ;;  %v1807_v15 = vcombine.low %v1742_v5, %v1758_v6  ;;  %v1808_v16 = vcombine.high %v1742_v5, %v1758_v6 }
 0x2f1   :  { %v1919_v18 = vrot.slane %v1911_v7, %v2441_v26  ;;  %v1926_v19 = vrot.slane %v1912_v8, %v2441_v26  ;;  %v1951_v20 = vrot.slane %v1943_v11, %v2441_v26  ;;  %v1958_v29 = vrot.slane %v1944_v13, %v2441_v26 }
 0x2f2   :  { %v1783_v37 = vrot.slane %v1775_v63, %v2441_v26  ;;  %v1790_v23 = vrot.slane %v1776_v14, %v2441_v26  ;;  %v1815_v48 = vrot.slane %v1807_v15, %v2441_v26  ;;  %v1822_v21 = vrot.slane %v1808_v16, %v2441_v26 }
 0x2f3   :  { %v1963_v22 = vcombine.low %v1919_v18, %v1951_v20  ;;  %v1964_v24 = vcombine.high %v1919_v18, %v1951_v20  ;;  %v1965_v47 = vcombine.low %v1926_v19, %v1958_v29  ;;  %v1966_v35 = vcombine.high %v1926_v19, %v1958_v29 }
 0x2f4   :  { %v1827_v53 = vcombine.low %v1783_v37, %v1815_v48  ;;  %v1828_v60 = vcombine.high %v1783_v37, %v1815_v48  ;;  %v1829_v27 = vcombine.low %v1790_v23, %v1822_v21  ;;  %v1830_v28 = vcombine.high %v1790_v23, %v1822_v21 }
 0x2f5   :  { %v2158_v17 = vpack.c.bf16 %v1963_v22, %v1963_v22  ;;  %v2160_v12 = vpack.c.bf16 %v1964_v24, %v1964_v24  ;;  %v2162_v31 = vpack.c.bf16 %v1965_v47, %v1965_v47  ;;  %v2164_v33 = vpack.c.bf16 %v1966_v35, %v1966_v35 }
 0x2f6   :  { %v2157_v34 = vpack.c.bf16 %v1827_v53, %v1827_v53  ;;  %v2159_v36 = vpack.c.bf16 %v1828_v60, %v1828_v60  ;;  %v2161_v25 = vpack.c.bf16 %v1829_v27, %v1829_v27  ;;  %v2163_v38 = vpack.c.bf16 %v1830_v28, %v1830_v28 }
 0x2f7   :  { %2041 = vst.msk [vmem:[#allocation2 + $0x24] sm:$0xf] %vm2031_vm9, %v2158_v17  ;;  %2043 = vst.msk [vmem:[#allocation2 + $0x2c] sm:$0xf] %vm2031_vm9, %v2160_v12 }
 0x2f8   :  { %2045 = vst.msk [vmem:[#allocation2 + $0x34] sm:$0xf] %vm2031_vm9, %v2162_v31  ;;  %2047 = vst.msk [vmem:[#allocation2 + $0x3c] sm:$0xf] %vm2031_vm9, %v2164_v33 }
 0x2f9   :  { %2040 = vst.msk [vmem:[#allocation2 + $0x20] sm:$0xf] %vm2031_vm9, %v2157_v34  ;;  %2042 = vst.msk [vmem:[#allocation2 + $0x28] sm:$0xf] %vm2031_vm9, %v2159_v36 }
 0x2fa   :  { %2044 = vst.msk [vmem:[#allocation2 + $0x30] sm:$0xf] %vm2031_vm9, %v2161_v25  ;;  %2046 = vst.msk [vmem:[#allocation2 + $0x38] sm:$0xf] %vm2031_vm9, %v2163_v38 }
 0x2fb   :  { %2282 = shalt.err (!%p2279_p4)
}
 0x2fc   :  { %s2304_s20 = smov 4  }
 0x2fd   :  { %2059 = dma.vmem_to_hbm [thread:$0]  %s2054_s18, 1024, %s2790_s3, [#allocation3], %s2295_s0, %s2295_s0, %s2304_s20  }
 0x2fe   :  { %2291 = dma.done.wait [#allocation3], 1024  }
 0x2ff   :  { %2292 = vsyncadd [#allocation3], 4294966272 }
 0x300   :  { %2063 = vsyncpa [#allocation3], 1 }

</bundles_post_ra>
